<compile_context>
chip_gen: v6e
topology: v6e:2x2x1
jax: 0.10.0
libtpu: 0.0.40
codegen_flags: <defaults>
</compile_context>

<pallas_src>
import functools

import jax
import jax.numpy as jnp
from jax.experimental import pallas as pl
from jax.experimental.pallas import tpu as pltpu


_LANE = 128


def _round_up(x, m):
    return ((x + m - 1) // m) * m


def _pad2d(x, rows, cols):
    r, c = x.shape
    if r == rows and c == cols:
        return x
    return jnp.pad(x, ((0, rows - r), (0, cols - c)))


def _vmem_budget_bytes():
    """Scoped-VMEM budget derived from the chip (64 MiB/TC v7x, 128 MiB v5e/v6e)."""
    try:
        cap = pltpu.get_tpu_info().vmem_capacity_bytes
    except Exception:  # non-TPU backend / interpret mode
        cap = 64 * 1024 * 1024
    return max(32 * 1024 * 1024, min(cap * 3 // 4, 96 * 1024 * 1024))


def _choose_tiles(n, fout_p, a_itemsize, budget):
    """Pick (tm, tk, n_pad, xw_resident) for the A @ XW aggregation matmul."""
    n0 = _round_up(n, _LANE)

    # K tile: as large as possible (fewer grid steps -> less per-step overhead)
    # while the extra zero padding it forces stays small (do NOT blindly round
    # N up to a multiple of a huge tk).
    tk = _LANE
    for cand in (2048, 1024, 512, 256, 128):
        if cand > n0:
            continue
        waste = _round_up(n0, cand) - n0
        if waste <= max(_LANE, n0 // 32):
            tk = cand
            break
    n_pad = _round_up(n0, tk)

    xw_bytes = n_pad * fout_p * 4                 # f32 XW slab
    xw_resident = 2 * xw_bytes <= budget // 2     # account for double buffering

    def vmem_ok(tm):
        a = 2 * tm * tk * a_itemsize              # A tiles, double-buffered
        xw = 2 * xw_bytes if xw_resident else 2 * tk * fout_p * 4
        acc = tm * fout_p * 4
        out = 2 * tm * fout_p * 4
        return a + xw + acc + out + (2 << 20) <= budget

    # Row tile: biggest that fits VMEM, divides n_pad, keeps >= 2 row tiles
    # (v7x megacore sharding of the "parallel" axis), multiple of 32 so int8
    # adjacency blocks satisfy Mosaic's packed (32, 128) tiling.
    tm = 32
    for cand in (1024, 512, 256, 128, 64, 32):
        if cand > n_pad or n_pad % cand:
            continue
        if n_pad // cand < 2 and n_pad > 32:
            continue
        if vmem_ok(cand):
            tm = cand
            break
    return tm, tk, n_pad, xw_resident


def _block_sparse_metadata(adj, tm, tk):
    """Per-row-tile nonzero-block schedule for the scalar-prefetched index maps.

    ids[i, k]  : column index of the k-th nonzero (tm, tk) block of row tile i;
                 entries past counts[i] repeat the last valid id so the
                 pipeline never issues a fresh DMA for a skipped step.
    counts[i]  : number of nonzero blocks in row tile i.
    """
    n_pad = adj.shape[0]
    n_r, n_k = n_pad // tm, n_pad // tk
    blocks = (adj != 0).reshape(n_r, tm, n_k, tk)
    mask = jnp.any(blocks, axis=(1, 3))                               # [nR, nK]
    counts = jnp.sum(mask, axis=1).astype(jnp.int32)                  # [nR]
    col = jnp.arange(n_k, dtype=jnp.int32)
    order = jnp.argsort(jnp.where(mask, col, col + n_k), axis=1).astype(jnp.int32)
    last = jnp.take_along_axis(order, jnp.maximum(counts - 1, 0)[:, None], axis=1)
    ids = jnp.where(col[None, :] < counts[:, None], order, last).astype(jnp.int32)
    return ids.reshape(-1), counts


# --------------------------------------------------------------------------
# Kernel 1: feature transform  XW = X @ W   (row-tiled, f32)
# --------------------------------------------------------------------------
def _xw_kernel(x_ref, w_ref, o_ref):
    o_ref[...] = jnp.dot(x_ref[...], w_ref[...],
                         preferred_element_type=jnp.float32).astype(o_ref.dtype)


def feature_transform(x, w, *, tm, vmem_limit):
    n, fin = x.shape
    fout = w.shape[1]
    return pl.pallas_call(
        _xw_kernel,
        out_shape=jax.ShapeDtypeStruct((n, fout), jnp.float32),
        grid_spec=pltpu.PrefetchScalarGridSpec(
            num_scalar_prefetch=0,
            grid=(n // tm,),
            in_specs=[pl.BlockSpec((tm, fin), lambda i: (i, 0)),
                      pl.BlockSpec((fin, fout), lambda i: (0, 0))],   # W resident
            out_specs=pl.BlockSpec((tm, fout), lambda i: (i, 0)),
        ),
        compiler_params=pltpu.CompilerParams(
            dimension_semantics=("parallel",),
            vmem_limit_bytes=vmem_limit),
    )(x, w)


# --------------------------------------------------------------------------
# Kernel 2: aggregation  H = A @ XW + b  (+ ReLU / masked log-softmax)
# --------------------------------------------------------------------------
def _aggregate_kernel(ids_ref, cnt_ref, a_ref, xw_ref, b_ref, o_ref, acc_ref, *,
                      apply_relu, apply_logsoftmax, fout_true,
                      xw_resident, tk, n_blocks_k):
    i = pl.program_id(0)
    k = pl.program_id(1)

    @pl.when(k == 0)
    def _init():
        acc_ref[...] = jnp.zeros_like(acc_ref)

    # Block-sparse skip: only nonzero adjacency tiles contribute.  Skipped
    # steps re-use the previously fetched block (repeated index => no DMA).
    @pl.when(k < cnt_ref[i])
    def _accumulate():
        a = a_ref[...].astype(jnp.float32)     # int8 {0,1} -> f32 on the VPU
        if xw_resident:
            start = pl.multiple_of(ids_ref[i * n_blocks_k + k] * tk, tk)
            xw = xw_ref[pl.ds(start, tk), :]   # slice K-slab of resident XW
        else:
            xw = xw_ref[...]                   # streamed (tk, fout) slab
        acc_ref[...] += jnp.dot(a, xw, preferred_element_type=jnp.float32)

    @pl.when(k == pl.num_programs(1) - 1)
    def _finalize():
        h = acc_ref[...] + b_ref[...]          # f32 epilogue, once per row tile
        if apply_relu:
            h = jnp.maximum(h, 0.0)
        if apply_logsoftmax:
            # Mask padded feature lanes so they do not pollute max / sum.
            lane = jax.lax.broadcasted_iota(jnp.int32, h.shape, 1)
            hm = jnp.where(lane < fout_true, h, -jnp.inf)
            m = jnp.max(hm, axis=-1, keepdims=True)
            s = jnp.sum(jnp.exp(hm - m), axis=-1, keepdims=True)
            h = h - m - jnp.log(s)
        o_ref[...] = h.astype(o_ref.dtype)


def aggregate(ids_flat, counts, adj, xw, b, *, tm, tk, xw_resident,
              apply_relu, apply_logsoftmax, fout_true, vmem_limit):
    n_pad = adj.shape[0]
    fout_p = xw.shape[1]
    n_r, n_k = n_pad // tm, n_pad // tk

    kernel = functools.partial(
        _aggregate_kernel, apply_relu=apply_relu,
        apply_logsoftmax=apply_logsoftmax, fout_true=fout_true,
        xw_resident=xw_resident, tk=tk, n_blocks_k=n_k)

    if xw_resident:
        # Constant block index -> XW is DMA'd from HBM exactly once and stays
        # resident in VMEM for the whole grid (kills the per-row-tile re-read).
        xw_spec = pl.BlockSpec((n_pad, fout_p), lambda i, k, ids, cnt: (0, 0))
    else:
        # Stream only the K-slabs belonging to nonzero adjacency blocks.
        xw_spec = pl.BlockSpec((tk, fout_p),
                               lambda i, k, ids, cnt: (ids[i * n_k + k], 0))

    return pl.pallas_call(
        kernel,
        out_shape=jax.ShapeDtypeStruct((n_pad, fout_p), jnp.float32),
        grid_spec=pltpu.PrefetchScalarGridSpec(
            num_scalar_prefetch=2,          # ids_flat, counts -> SMEM
            grid=(n_r, n_k),                # reduction (K) axis last
            in_specs=[
                pl.BlockSpec((tm, tk), lambda i, k, ids, cnt: (i, ids[i * n_k + k])),
                xw_spec,
                pl.BlockSpec((1, fout_p), lambda i, k, ids, cnt: (0, 0)),
            ],
            out_specs=pl.BlockSpec((tm, fout_p), lambda i, k, ids, cnt: (i, 0)),
            scratch_shapes=[pltpu.VMEM((tm, fout_p), jnp.float32)],
        ),
        compiler_params=pltpu.CompilerParams(
            dimension_semantics=("parallel", "arbitrary"),
            vmem_limit_bytes=vmem_limit),
    )(ids_flat, counts, adj, xw, b)


# --------------------------------------------------------------------------
# Model
# --------------------------------------------------------------------------
class GCNProductsPallas:
    """JAX/Pallas equivalent of the PyTorch GCN_products module (inference)."""

    def __init__(self, nfeat, nhid, nclass, dropout, num_layers, key):
        # TODO(synk): dropout is identity (eval mode); no RNG mask applied.
        self.dropout = dropout
        dims = [nfeat] + [nhid] * (num_layers - 1) + [nclass]
        self.dims = dims
        self.params = []  # (w_padded_f32, b_padded_f32, fin, fout)
        for li in range(num_layers):
            fin, fout = dims[li], dims[li + 1]
            fin_p, fout_p = _round_up(fin, _LANE), _round_up(fout, _LANE)
            key, wk = jax.random.split(key)
            limit = (6.0 / (fin + fout)) ** 0.5      # Glorot (GCNConv default)
            w = jax.random.uniform(wk, (fin, fout), jnp.float32, -limit, limit)
            b = jnp.zeros((1, fout), jnp.float32)    # GCNConv bias init: zeros
            self.params.append((_pad2d(w, fin_p, fout_p), _pad2d(b, 1, fout_p),
                                fin, fout))

    def __call__(self, x, adj_t):
        n = x.shape[0]
        budget = _vmem_budget_bytes()
        fout_p_max = max(_round_up(f, _LANE) for _, _, _, f in self.params)

        # Store the dense adjacency as int8 when it is exactly {0,1} (lossless,
        # shrinks the dominant HBM stream 4x); non-binary graphs stay f32.
        adj_f = adj_t.astype(jnp.float32)
        is_binary = bool(jnp.all((adj_f == 0.0) | (adj_f == 1.0)))
        a_itemsize = 1 if is_binary else 4

        tm, tk, n_pad, xw_resident = _choose_tiles(n, fout_p_max, a_itemsize,
                                                   budget)
        adj_p = _pad2d(adj_f, n_pad, n_pad)
        adj_q = adj_p.astype(jnp.int8) if is_binary else adj_p

        # Block-sparse schedule shared by every layer (adjacency is reused).
        ids_flat, counts = _block_sparse_metadata(adj_q, tm, tk)

        fin0_p = _round_up(self.dims[0], _LANE)
        h = _pad2d(x.astype(jnp.float32), n_pad, fin0_p)

        n_layers = len(self.params)
        nclass = self.params[-1][3]
        for li, (w_p, b_p, fin, fout) in enumerate(self.params):
            last = li == n_layers - 1
            xw = feature_transform(h, w_p, tm=tm, vmem_limit=budget)
            h = aggregate(ids_flat, counts, adj_q, xw, b_p,
                          tm=tm, tk=tk, xw_resident=xw_resident,
                          apply_relu=not last, apply_logsoftmax=last,
                          fout_true=fout, vmem_limit=budget)
        return h[:n, :nclass]


def _reference_forward(x, adj, model):
    """Pure-JAX f32 reference using the exact same weights."""
    h = x.astype(jnp.float32)
    n_layers = len(model.params)
    for li, (w_p, b_p, fin, fout) in enumerate(model.params):
        w = w_p[:fin, :fout]
        b = b_p[:, :fout]
        h = adj @ (h @ w) + b
        if li < n_layers - 1:
            h = jnp.maximum(h, 0.0)
    return jax.nn.log_softmax(h, axis=-1)


if __name__ == "__main__":
    key = jax.random.PRNGKey(0)
    k_x, k_a, k_m = jax.random.split(key, 3)

    # Small synthetic graph: 64 nodes, 16 input feats, 32 hidden, 8 classes.
    N, NFEAT, NHID, NCLASS, NLAYERS = 64, 16, 32, 8, 3

    x = jax.random.normal(k_x, (N, NFEAT), jnp.float32)
    # Dense symmetric adjacency with self loops (values in {0,1}).
    a_rand = jax.random.uniform(k_a, (N, N), jnp.float32)
    adj = (a_rand > 0.9).astype(jnp.float32)
    adj = jnp.maximum(adj, adj.T)
    adj = jnp.maximum(adj, jnp.eye(N, dtype=jnp.float32))

    model = GCNProductsPallas(NFEAT, NHID, NCLASS, dropout=0.5,
                              num_layers=NLAYERS, key=k_m)

    out = jax.block_until_ready(model(x, adj))
    assert out.shape == (N, NCLASS)

    # Sanity: log-softmax rows exponentiate and sum to 1.
    row_sums = jnp.exp(out).sum(axis=-1)
    assert bool(jnp.allclose(row_sums, 1.0, atol=1e-3)), "row sums off"

    # Numerical check against the pure-JAX f32 reference (same weights; only
    # matmul accumulation-order / MXU-pass differences remain).
    ref = _reference_forward(x, adj, model)
    max_err = float(jnp.max(jnp.abs(out - ref)))
    assert max_err < 0.15, f"max |out - ref| = {max_err}"

    print("KERNEL_OK")
</pallas_src>

<mosaic_0001>
module attributes {stable_mosaic.version = 11 : i64} {
  func.func @_xw_kernel(%arg0: i32, %arg1: memref<64x128xf32, #tpu.memory_space<vmem>>, %arg2: memref<128x128xf32, #tpu.memory_space<vmem>>, %arg3: memref<64x128xf32, #tpu.memory_space<vmem>>) attributes {dimension_semantics = [#tpu.dimension_semantics<parallel>], iteration_bounds = array<i64: 2>, scalar_prefetch = 0 : i64, scratch_operands = 0 : i64, tpu.core_type = #tpu.core_type<tc>, window_params = [{transform_indices = @transform_0, window_bounds = array<i64: 64, 128>}, {pipeline_mode = #tpu.pipeline_mode<synchronous>, transform_indices = @transform_1, window_bounds = array<i64: 128, 128>}, {transform_indices = @transform_2, window_bounds = array<i64: 64, 128>}]} {
    %c0 = arith.constant 0 : index
    %c0_0 = arith.constant 0 : index
    %0 = vector.load %arg1[%c0, %c0_0] : memref<64x128xf32, #tpu.memory_space<vmem>>, vector<64x128xf32>
    %c0_1 = arith.constant 0 : index
    %c0_2 = arith.constant 0 : index
    %1 = vector.load %arg2[%c0_1, %c0_2] : memref<128x128xf32, #tpu.memory_space<vmem>>, vector<128x128xf32>
    %cst = arith.constant dense<0.000000e+00> : vector<64x128xf32>
    %2 = tpu.matmul %0, %1, %cst {dimension_numbers = #tpu.dot_dimension_numbers<[1], [0], [0], [1], [0, 0, 1, 1], [], []>} : vector<64x128xf32>, vector<128x128xf32>, vector<64x128xf32> -> vector<64x128xf32>
    %c0_3 = arith.constant 0 : index
    %c0_4 = arith.constant 0 : index
    %3 = vector.load %arg3[%c0_3, %c0_4] : memref<64x128xf32, #tpu.memory_space<vmem>>, vector<64x128xf32>
    tpu.vector_store %arg3[%c0_3, %c0_4], %2 {strides = array<i32>} : memref<64x128xf32, #tpu.memory_space<vmem>>, vector<64x128xf32>,
    return
  }
  func.func @transform_0(%arg0: i32) -> (i32, i32) {
    %c0_i32 = arith.constant 0 : i32
    %c0_i32_0 = arith.constant 0 : i32
    return %arg0, %c0_i32 : i32, i32
  }
  func.func @transform_1(%arg0: i32) -> (i32, i32) {
    %c0_i32 = arith.constant 0 : i32
    %c0_i32_0 = arith.constant 0 : i32
    %c0_i32_1 = arith.constant 0 : i32
    return %c0_i32, %c0_i32_0 : i32, i32
  }
  func.func @transform_2(%arg0: i32) -> (i32, i32) {
    %c0_i32 = arith.constant 0 : i32
    %c0_i32_0 = arith.constant 0 : i32
    return %arg0, %c0_i32 : i32, i32
  }
}

</mosaic_0001>

<bundles_post_ra>
// kernel: tpu_custom_call.1
= control target key start
LH: loop header
LB: loop body
LE: loop exit
PB: predicated region body
PF: predicated region fallthrough
CT: control target
= control target key end

     0   :  { %7 = vsyncpa [#allocation3], 0  ;;  %s935_s0 = inlined_call_operand.hbm [shape: f32[128,128], index: 0, kind: input, shape index: {}]   ;;  %s936_s1 = inlined_call_operand.hbm [shape: f32[128,128], index: 1, kind: input, shape index: {}]   ;;  %s937_s2 = inlined_call_operand.hbm [shape: f32[128,128], index: 2, kind: output, shape index: {}]  }
   0x1   :  { %9 = vsyncpa [#allocation3 + $0x1], 0 }
   0x2   :  { %10 = vsyncpa [#allocation6], 0 }
   0x3   :  { %11 = vsyncpa [#allocation4], 0 }
   0x4   :  { %13 = vsyncpa [#allocation4 + $0x1], 0  ;;  %s738_s9 = smov 0   ;;  %s740_s10 = smov 0  }
   0x5   :  { %s742_s11 = smov 0   ;;  %s744_s12 = smov 0  }
   0x6 LB: > { %s759_s13 = sadd.s32 4294967295, %s714_s12   ;;  %s413_s14 = sadd.s32 4294967294, %s714_s12   ;;  %s714_s12 = sphi %s744_s12, %s959_s12   ;;  %s710_s11 = sphi %s742_s11, %s958_s11   ;;  %s706_s10 = sphi %s740_s10, %s957_s10   ;;  %s702_s9 = sphi %s738_s9, %s956_s9  }
   0x7   : > { %p39_p0 = scmp.ne.s32.totalorder %s706_s10, %s702_s9  ;;  %p938_p1 = scmp.eq.s32.totalorder %s759_s13, 0 }
   0x8   : > { %p90_p3 = scmp.eq.s32.totalorder %s413_s14, 1  ;;  %p414_p5 = scmp.ge.s32.totalorder %s714_s12, 1 }
   0x9   : > { %p768_p4 = por %p938_p1, %p39_p0  ;;  %p97_p7 = scmp.lt.s32.totalorder %s714_s12, 3 }
   0xa   : > { %p773_p6 = por %p90_p3, %p39_p0  ;;  %s716_s18 = smov [#allocation5]  }
   0xb   : > { %s942_s15 = scalar_select %p768_p4, 1, 0 }
   0xc   : > { %s943_s16 = scalar_select %p773_p6, 1, 0 }
   0xd   : > { %p778_p8 = pnand %p414_p5, %p97_p7  ;;  %s109_s19 = sshll.u32 %s716_s18, 4  ;;  %s110_s19 = int_to_ptr.vmem [resolvable:$true] %s109_s19 }
   0xe   : > { %s792_s21 = sadd.s32 1, %s714_s12   ;;  %s26_s22 = sadd.s32 1, %s710_s11 }
   0xf   : > { %s944_s17 = scalar_select %p778_p8, 1, 0 }
  0x10   : > { %p539_p9 = pneg %p778_p8  ;;  %s23_s23 = ssub.s32 %s714_s12, %s792_s21 }
  0x11   : > { %s603_s24 = scalar_lea.vmem %s110_s19, 2048  ;;  %p611_p5 = scmp.lt.s32.totalorder %s110_s19, %s110_s19 }
  0x12   : > { %p787_p11 = pnand %p539_p9, %p938_p1  ;;  %p604_p13 = scmp.ne.s32.totalorder %s110_s19, %s603_s24 }
  0x13   : > { %p612_p7 = scmp.lt.s32.totalorder %s603_s24, %s603_s24 }
  0x14   : > { %p594_p12 = pneg %p787_p11 }
  0x15   : > { %p613_p10 = por %p612_p7, %p611_p5 }
  0x16   : > { %p606_p0 = pnand %p604_p13, %p594_p12 }
  0x18   : > { %p607_p3 = pneg %p606_p0 }
  0x1a   : > { %p614_p2 = pnand %p613_p10, %p607_p3 }
  0x1c   : > { %617 = shalt.err (!%p614_p2)
}
  0x1d   : > { %s717_s25 = smov 128   ;;  %s718_s26 = smov 8  }
  0x1e   : > { %542 = dma.hbm_to_vmem [thread:$0]  (!%p787_p11), %s936_s1, 2048, %s110_s19, [#allocation6], %s717_s25, %s717_s25, %s718_s26  }
  0x1f   : > { %p24_p2 = scmp.eq.s32.totalorder %s23_s23, 0  ;;  %p33_p9 = scmp.ne.s32.totalorder %s710_s11, %s706_s10 }
  0x20   : > { %p34_p10 = scmp.eq.s32.totalorder %s714_s12, 0  ;;  %p552_p12 = scmp.lt.s32.totalorder %s714_s12, 2 }
  0x21   : > { %s812_s29 = scalar_select %p24_p2, %s710_s11, %s26_s22  }
  0x22   : > { %p35_p13 = por %p34_p10, %p33_p9  ;;  %p946_p0 = scmp.eq.s32.totalorder %s759_s13, 1 }
  0x23   : > { %s123_s3 = sand.u32 1, %s710_s11   ;;  %s429_s4 = sshll.u32 %s714_s12, 10 }
  0x24   : > { %p816_p3 = por %p946_p0, %p33_p9  ;;  %s417_s5 = sshll.u32 %s123_s3, 6 }
  0x25   : > { %s825_s8 = scalar_lea.hbm %s935_s0, %s429_s4  ;;  %s127_s14 = scalar_lea.vmem [#allocation2], %s417_s5 }
  0x26   : > { %s947_s30 = scalar_select %p816_p3, 1, 0 }
  0x27   : > { %s134_s18 = sshll.u32 %s127_s14, 4  ;;  %p827_p11 = pnand %p552_p12, %p35_p13  ;;  %s831_s18 = int_to_ptr.vmem [resolvable:$true] %s134_s18 }
  0x28   : > { %s833_s20 = scalar_lea.sflag [#allocation3], %s123_s3  ;;  %s618_s22 = scalar_lea.hbm %s825_s8, 1024 }
  0x29   : > { %p619_p5 = scmp.ne.s32.totalorder %s825_s8, %s618_s22  ;;  %p620_p7 = pneg %p827_p11 }
  0x2a   : > { %s623_s27 = scalar_lea.hbm %s935_s0, 2048  ;;  %p624_p10 = scmp.lt.s32.totalorder %s825_s8, %s935_s0 }
  0x2b   : > { %p621_p2 = pnand %p620_p7, %p619_p5  ;;  %p625_p12 = scmp.lt.s32.totalorder %s623_s27, %s618_s22 }
  0x2d   : > { %p622_p9 = pneg %p621_p2  ;;  %p626_p13 = por %p625_p12, %p624_p10 }
  0x2f   : > { %p627_p0 = pnand %p626_p13, %p622_p9 }
  0x31   : > { %630 = shalt.err (!%p627_p0)
}
  0x32   : > { %s631_s3 = scalar_lea.vmem %s831_s18, 1024  ;;  %s719_s5 = smov [#allocation2]  }
  0x33   : > { %p632_p1 = scmp.ne.s32.totalorder %s831_s18, %s631_s3  ;;  %s636_s6 = sshll.u32 %s719_s5, 4  ;;  %s637_s6 = int_to_ptr.vmem [resolvable:$false] %s636_s6 }
  0x34   : > { %s638_s7 = scalar_lea.vmem %s637_s6, 2048  ;;  %p639_p2 = scmp.lt.s32.totalorder %s831_s18, %s637_s6 }
  0x35   : > { %p634_p6 = pnand %p632_p1, %p620_p7  ;;  %p640_p3 = scmp.lt.s32.totalorder %s638_s7, %s631_s3 }
  0x37   : > { %p635_p5 = pneg %p634_p6  ;;  %p641_p4 = por %p640_p3, %p639_p2 }
  0x39   : > { %p642_p8 = pnand %p641_p4, %p635_p5 }
  0x3b   : > { %645 = shalt.err (!%p642_p8)
}
  0x3c   : > { %546 = dma.hbm_to_vmem [thread:$0]  (!%p827_p11), %s825_s8, 1024, %s831_s18, %s833_s20, %s717_s25, %s717_s25, %s718_s26  }
  0x3d   : > { %p949_p1 = scmp.ne.s32.totalorder %s944_s17, 0 }
  0x3e   : > { %s860_s14 = sand.u32 (!%p949_p1), 1, %s706_s10   ;;  %p950_p4 = scmp.ne.s32.totalorder (!%p949_p1), %s942_s15, 0 }
  0x3f   : > { %146 = sbr.rel (%p949_p1) target bundleno = 319 (0x13f), region = 28  ;;  %s421_s22 = sshll.u32 (!%p949_p1), %s860_s14, 6 }
  0x40   : > { %s149_s23 = scalar_lea.sflag (!%p949_p1), [#allocation3], %s860_s14  ;;  %s866_s19 = scalar_lea.vmem (!%p949_p1), [#allocation2], %s421_s22 }
  0x44   : > { %689 = dma.done.wait (%p950_p4), %s149_s23, 1024  }
  0x45   : > { %691 = vsyncadd (%p950_p4), %s149_s23, 4294966272  ;;  %p951_p6 = scmp.eq.s32.totalorder %s759_s13, 0 }
  0x47   : > { %693 = dma.done.wait (%p951_p6), [#allocation6], 2048   ;;  %p952_p8 = pmov %p951_p6 }
  0x48   : > { %v202_v0 = vld [vmem:[#allocation5 + $0x78] sm:$0xff]  ;;  %v201_v1 = vld [vmem:[#allocation5 + $0x70] sm:$0xff]  ;;  %v200_v2 = vld [vmem:[#allocation5 + $0x68] sm:$0xff]  ;;  %s176_s15 = scalar_lea.vmem [#allocation7], %s421_s22  ;;  %s430_s25 = sshll.u32 %s759_s13, 10 }
  0x49   : > { %695 = vsyncadd (%p952_p8), [#allocation6], 4294965248  ;;  %455 = vmatprep.subr.mxu0 %v202_v0  ;;  %499 = vmatprep.subr.mxu1 %v202_v0  ;;  %v199_v3 = vld [vmem:[#allocation5 + $0x60] sm:$0xff]  ;;  %v198_v4 = vld [vmem:[#allocation5 + $0x58] sm:$0xff]  ;;  %s330_s17 = sshll.u32 %s176_s15, 4  ;;  %s892_s18 = scalar_lea.hbm %s937_s2, %s430_s25  ;;  %s887_s17 = int_to_ptr.vmem [resolvable:$true] %s330_s17 }
  0x4a   : > { %456 = vmatpush3.msra.mxu0 %v202_v0  ;;  %515 = vmatpush3.msra.mxu1 %v202_v0  ;;  %v197_v5 = vld [vmem:[#allocation5 + $0x50] sm:$0xff]  ;;  %v196_v6 = vld [vmem:[#allocation5 + $0x48] sm:$0xff]  ;;  %v195_v7 = vld [vmem:[#allocation5 + $0x40] sm:$0xff]  ;;  %s317_s13 = scalar_lea.sflag [#allocation4], %s860_s14  ;;  %s646_s20 = scalar_lea.vmem %s887_s17, 1024 }
  0x4b   : > { %457 = vmatprep.subr.mxu0 %v201_v1  ;;  %500 = vmatprep.subr.mxu1 %v201_v1  ;;  %v194_v8 = vld [vmem:[#allocation5 + $0x38] sm:$0xff]  ;;  %v193_v9 = vld [vmem:[#allocation5 + $0x30] sm:$0xff]  ;;  %v192_v10 = vld [vmem:[#allocation5 + $0x28] sm:$0xff]  ;;  %p647_p3 = scmp.ne.s32.totalorder %s887_s17, %s646_s20  ;;  %p953_p11 = scmp.ne.s32.totalorder %s947_s30, 0 }
  0x4c   : > { %458 = vmatpush3.msra.mxu0 %v201_v1  ;;  %516 = vmatpush3.msra.mxu1 %v201_v1  ;;  %v191_v11 = vld [vmem:[#allocation5 + $0x20] sm:$0xff]  ;;  %v190_v12 = vld [vmem:[#allocation5 + $0x18] sm:$0xff]  ;;  %v189_v13 = vld [vmem:[#allocation5 + $0x10] sm:$0xff]  ;;  %s720_s24 = smov [#allocation7]  }
  0x4d   : > { %459 = vmatprep.subr.mxu0 %v200_v2  ;;  %501 = vmatprep.subr.mxu1 %v200_v2  ;;  %v188_v14 = vld [vmem:[#allocation5 + $0x8] sm:$0xff]  ;;  %v187_v15 = vld [vmem:[#allocation5] sm:$0xff]  ;;  %v181_v20 = vld [vmem:[%s866_s19 + $0x10] sm:$0xff]  ;;  %p648_p7 = pnand %p647_p3, %p953_p11  ;;  %s650_s27 = sshll.u32 %s720_s24, 4  ;;  %s651_s27 = int_to_ptr.vmem [resolvable:$false] %s650_s27 }
  0x4e   : > { %460 = vmatpush3.msra.mxu0 %v200_v2  ;;  %517 = vmatpush3.msra.mxu1 %v200_v2  ;;  %v179_v16 = vld [vmem:[%s866_s19] sm:$0xff]  ;;  %v180_v18 = vld [vmem:[%s866_s19 + $0x8] sm:$0xff]  ;;  %v185_v21 = vld [vmem:[%s866_s19 + $0x30] sm:$0xff]  ;;  %s652_s28 = scalar_lea.vmem %s651_s27, 2048  ;;  %p653_p10 = scmp.lt.s32.totalorder %s887_s17, %s651_s27 }
  0x4f   : > { %461 = vmatprep.subr.mxu0 %v199_v3  ;;  %502 = vmatprep.subr.mxu1 %v199_v3  ;;  %v183_v17 = vld [vmem:[%s866_s19 + $0x20] sm:$0xff]  ;;  %v184_v19 = vld [vmem:[%s866_s19 + $0x28] sm:$0xff]  ;;  %v182_v22 = vld [vmem:[%s866_s19 + $0x18] sm:$0xff]  ;;  %p649_p9 = pneg %p648_p7  ;;  %p654_p12 = scmp.lt.s32.totalorder %s652_s28, %s646_s20 }
  0x50   : > { %462 = vmatpush3.msra.mxu0 %v199_v3  ;;  %518 = vmatpush3.msra.mxu1 %v199_v3  ;;  %v186_v23 = vld [vmem:[%s866_s19 + $0x38] sm:$0xff] }
  0x51   : > { %463 = vmatprep.subr.mxu0 %v198_v4  ;;  %503 = vmatprep.subr.mxu1 %v198_v4  ;;  %p655_p13 = por %p654_p12, %p653_p10 }
  0x52   : > { %464 = vmatpush3.msra.mxu0 %v198_v4  ;;  %519 = vmatpush3.msra.mxu1 %v198_v4 }
  0x53   : > { %465 = vmatprep.subr.mxu0 %v197_v5  ;;  %504 = vmatprep.subr.mxu1 %v197_v5  ;;  %p656_p0 = pnand %p655_p13, %p649_p9 }
  0x54   : > { %466 = vmatpush3.msra.mxu0 %v197_v5  ;;  %520 = vmatpush3.msra.mxu1 %v197_v5 }
  0x55   : > { %467 = vmatprep.subr.mxu0 %v196_v6  ;;  %505 = vmatprep.subr.mxu1 %v196_v6 }
  0x56   : > { %468 = vmatpush3.msra.mxu0 %v196_v6  ;;  %521 = vmatpush3.msra.mxu1 %v196_v6 }
  0x57   : > { %469 = vmatprep.subr.mxu0 %v195_v7  ;;  %506 = vmatprep.subr.mxu1 %v195_v7 }
  0x58   : > { %470 = vmatpush3.msra.mxu0 %v195_v7  ;;  %522 = vmatpush3.msra.mxu1 %v195_v7 }
  0x59   : > { %471 = vmatprep.subr.mxu0 %v194_v8  ;;  %507 = vmatprep.subr.mxu1 %v194_v8 }
  0x5a   : > { %472 = vmatpush3.msra.mxu0 %v194_v8  ;;  %523 = vmatpush3.msra.mxu1 %v194_v8 }
  0x5b   : > { %473 = vmatprep.subr.mxu0 %v193_v9  ;;  %508 = vmatprep.subr.mxu1 %v193_v9 }
  0x5c   : > { %474 = vmatpush3.msra.mxu0 %v193_v9  ;;  %524 = vmatpush3.msra.mxu1 %v193_v9 }
  0x5d   : > { %475 = vmatprep.subr.mxu0 %v192_v10  ;;  %509 = vmatprep.subr.mxu1 %v192_v10 }
  0x5e   : > { %476 = vmatpush3.msra.mxu0 %v192_v10  ;;  %525 = vmatpush3.msra.mxu1 %v192_v10 }
  0x5f   : > { %477 = vmatprep.subr.mxu0 %v191_v11  ;;  %510 = vmatprep.subr.mxu1 %v191_v11 }
  0x60   : > { %478 = vmatpush3.msra.mxu0 %v191_v11  ;;  %526 = vmatpush3.msra.mxu1 %v191_v11 }
  0x61   : > { %479 = vmatprep.subr.mxu0 %v190_v12  ;;  %511 = vmatprep.subr.mxu1 %v190_v12 }
  0x62   : > { %480 = vmatpush3.msra.mxu0 %v190_v12  ;;  %527 = vmatpush3.msra.mxu1 %v190_v12 }
  0x63   : > { %481 = vmatprep.subr.mxu0 %v189_v13  ;;  %512 = vmatprep.subr.mxu1 %v189_v13 }
  0x64   : > { %482 = vmatpush3.msra.mxu0 %v189_v13  ;;  %528 = vmatpush3.msra.mxu1 %v189_v13 }
  0x65   : > { %483 = vmatprep.subr.mxu0 %v188_v14  ;;  %513 = vmatprep.subr.mxu1 %v188_v14 }
  0x66   : > { %484 = vmatpush3.msra.mxu0 %v188_v14  ;;  %529 = vmatpush3.msra.mxu1 %v188_v14 }
  0x67   : > { %485 = vmatprep.subr.mxu0 %v187_v15  ;;  %514 = vmatprep.subr.mxu1 %v187_v15 }
  0x68   : > { %486 = vmatpush3.msra.mxu0 %v187_v15  ;;  %530 = vmatpush3.msra.mxu1 %v187_v15 }
  0x69   : > { %487 = vmatprep.mubr.f32.mxu0 %v179_v16  ;;  %493 = vmatprep.mubr.f32.mxu1 %v183_v17 }
  0x6a   : > { %488 = vmatmul.mubr.f32.vlgmr.msra.gmra.mxu0 %v180_v18  ;;  %494 = vmatmul.mubr.f32.vlgmr.msra.gmra.mxu1 %v184_v19 }
  0x6b   : > { %490 = vmatprep.mubr.f32.mxu0 %v181_v20  ;;  %496 = vmatprep.mubr.f32.mxu1 %v185_v21 }
  0x6e   : > { %491 = vmatmul.mubr.f32.gmra.mxu0 %v182_v22  ;;  %497 = vmatmul.mubr.f32.gmra.mxu1 %v186_v23 }
 0x12a   : > { %v489_v24 = vpop.f32.mrf.mxu0  ;;  %v495_v25 = vpop.f32.mrf.mxu1 }
 0x12b   : > { %309 = vst [vmem:[%s176_s15 + $0x8] sm:$0xff] %v489_v24  ;;  %313 = vst [vmem:[%s176_s15 + $0x28] sm:$0xff] %v495_v25 }
 0x12c   : > { %v269_v26 = vpop.f32.mrf.mxu0  ;;  %v289_v27 = vpop.f32.mrf.mxu1 }
 0x12d   : > { %308 = vst [vmem:[%s176_s15] sm:$0xff] %v269_v26  ;;  %312 = vst [vmem:[%s176_s15 + $0x20] sm:$0xff] %v289_v27 }
 0x12e   : > { %v492_v28 = vpop.f32.mrf.mxu0  ;;  %v498_v29 = vpop.f32.mrf.mxu1 }
 0x12f   : > { %311 = vst [vmem:[%s176_s15 + $0x18] sm:$0xff] %v492_v28  ;;  %315 = vst [vmem:[%s176_s15 + $0x38] sm:$0xff] %v498_v29 }
 0x130   : > { %v279_v30 = vpop.f32.mrf.mxu0  ;;  %v299_v31 = vpop.f32.mrf.mxu1 }
 0x131   : > { %310 = vst [vmem:[%s176_s15 + $0x10] sm:$0xff] %v279_v30  ;;  %314 = vst [vmem:[%s176_s15 + $0x30] sm:$0xff] %v299_v31 }
 0x132   : > { %659 = shalt.err (!%p656_p0)
}
 0x133   : > { %s660_s4 = scalar_lea.hbm %s892_s18, 1024  ;;  %s664_s6 = scalar_lea.hbm %s937_s2, 2048 }
 0x134   : > { %p661_p5 = scmp.ne.s32.totalorder %s892_s18, %s660_s4  ;;  %p665_p4 = scmp.lt.s32.totalorder %s892_s18, %s937_s2 }
 0x135   : > { %p666_p6 = scmp.lt.s32.totalorder %s664_s6, %s660_s4 }
 0x136   : > { %p662_p2 = pnand %p661_p5, %p953_p11 }
 0x137   : > { %p667_p8 = por %p666_p6, %p665_p4 }
 0x138   : > { %p663_p1 = pneg %p662_p2 }
 0x13a   : > { %p668_p3 = pnand %p667_p8, %p663_p1 }
 0x13c   : > { %671 = shalt.err (!%p668_p3)
}
 0x13d   : > { %s721_s23 = smov 128   ;;  %s722_s19 = smov 8  }
 0x13e   : > { %537 = dma.vmem_to_hbm [thread:$0]  (%p953_p11), %s887_s17, 1024, %s892_s18, %s317_s13, %s721_s23, %s721_s23, %s722_s19  }
 0x13f PF: > { %s345_s15 = sand.u32 1, %s702_s9   ;;  %p954_p7 = scmp.ne.s32.totalorder %s943_s16, 0 }
 0x140   : > { %p955_p9 = scmp.ge.s32.totalorder %s714_s12, 2  ;;  %s346_s25 = scalar_lea.sflag [#allocation4], %s345_s15 }
 0x142   : > { %p548_p10 = pnand %p955_p9, %p954_p7 }
 0x144   : > { %p549_p12 = pneg %p548_p10 }
 0x146   : > { %697 = dma.done.wait (%p549_p12), %s346_s25, 1024  }
 0x147   : > { %699 = vsyncadd (%p549_p12), %s346_s25, 4294966272  ;;  %p16_p13 = scmp.ge.s32.totalorder %s792_s21, 4   ;;  %s956_s9 = smov %s706_s10 }
 0x148   : > { %s957_s10 = smov %s710_s11  ;;  %s958_s11 = smov %s812_s29 }
 0x149   : > { %s959_s12 = smov %s792_s21  ;;  %18 = sbr.rel (!%p16_p13) target bundleno = 6 (0x6), region = 77 }
 0x14e   :  { %351 = vsyncpa [#allocation3], 1 }
 0x14f   :  { %353 = vsyncpa [#allocation3 + $0x1], 1 }
 0x150   :  { %354 = vsyncpa [#allocation6], 1 }
 0x151   :  { %355 = vsyncpa [#allocation4], 1 }
 0x152   :  { %357 = vsyncpa [#allocation4 + $0x1], 1 }

</bundles_post_ra>
